<compile_context>
chip_gen: v6e
topology: v6e:2x2x1
jax: 0.10.0
libtpu: 0.0.40
codegen_flags: <defaults>
</compile_context>

<pallas_src>
import jax
import jax.numpy as jnp
from jax.experimental import pallas as pl
from jax.experimental.pallas import tpu as pltpu


def _identity_kernel(x_ref, o_ref):
    # Whole-tile copy; pure VPU/DMA path (reference forward has no math).
    o_ref[...] = x_ref[...]


def _pick_row_block(B: int, D: int, itemsize: int) -> int:
    """Pick a sublane-aligned row-block so the double-buffered working set
    stays under the smallest (v5e) scoped-VMEM default."""
    max_block_bytes = 4 << 20  # 4 MiB/block -> <=16 MiB live across buffers
    rows = max(1, max_block_bytes // max(1, D * itemsize))
    if rows >= B:
        return B  # full extent is always a legal block shape
    rows = max(8, (rows // 8) * 8)  # keep f32 (8, 128) tiling unmasked
    return min(rows, B)


def _passthrough(features: jax.Array) -> jax.Array:
    """Row-tiled identity pass; output aliases the input HBM buffer."""
    B, D = features.shape
    block_rows = _pick_row_block(B, D, features.dtype.itemsize)
    grid = (pl.cdiv(B, block_rows),)
    return pl.pallas_call(
        _identity_kernel,
        out_shape=jax.ShapeDtypeStruct((B, D), features.dtype),
        grid_spec=pl.GridSpec(
            grid=grid,
            in_specs=[pl.BlockSpec((block_rows, D), lambda i: (i, 0))],
            out_specs=pl.BlockSpec((block_rows, D), lambda i: (i, 0)),
        ),
        # No separate output allocation/writeback: out buffer == in buffer.
        input_output_aliases={0: 0},
        compiler_params=pltpu.CompilerParams(
            dimension_semantics=("parallel",),
        ),
    )(features)


def similarity_loss_forward(features: jax.Array, labels=None):
    """Faithful SimilarityLoss.forward: `print(1)`, return None.

    The reference module performs no tensor compute, so no device work is
    issued here (the previous identity copy was dead work and has been
    removed from the hot path per the performance review).
    """
    # TODO(synk): the reference module defines no loss math to translate;
    # the Pallas identity kernel (_passthrough) is kept only to exercise
    # the TPU path outside the forward.
    print(1)
    return None


if __name__ == "__main__":
    key = jax.random.PRNGKey(0)
    k_feat, k_lab = jax.random.split(key)
    # Small (batch, feature) shapes consistent with a similarity-loss input.
    features = jax.random.normal(k_feat, (8, 128), dtype=jnp.float32)
    labels = jax.random.randint(k_lab, (8,), 0, 4, dtype=jnp.int32)

    out = similarity_loss_forward(features, labels)
    assert out is None  # matches PyTorch forward's implicit None return

    # Exercise the Pallas identity kernel once, independent of the forward.
    expected = jax.device_get(features)  # host copy (input is aliased/donated)
    y = jax.block_until_ready(_passthrough(features))
    assert y.shape == expected.shape and y.dtype == expected.dtype
    assert jnp.allclose(y, jnp.asarray(expected))
    print("KERNEL_OK")
</pallas_src>

<mosaic_0001>
module attributes {stable_mosaic.version = 11 : i64} {
  func.func @_identity_kernel(%arg0: i32, %arg1: memref<8x128xf32, #tpu.memory_space<vmem>>, %arg2: memref<8x128xf32, #tpu.memory_space<vmem>>) attributes {dimension_semantics = [#tpu.dimension_semantics<parallel>], iteration_bounds = array<i64: 1>, scalar_prefetch = 0 : i64, scratch_operands = 0 : i64, tpu.core_type = #tpu.core_type<tc>, window_params = [{transform_indices = @transform_0, window_bounds = array<i64: 8, 128>}, {transform_indices = @transform_1, window_bounds = array<i64: 8, 128>}]} {
    %c0 = arith.constant 0 : index
    %c0_0 = arith.constant 0 : index
    %0 = vector.load %arg1[%c0, %c0_0] : memref<8x128xf32, #tpu.memory_space<vmem>>, vector<8x128xf32>
    %c0_1 = arith.constant 0 : index
    %c0_2 = arith.constant 0 : index
    %1 = vector.load %arg2[%c0_1, %c0_2] : memref<8x128xf32, #tpu.memory_space<vmem>>, vector<8x128xf32>
    tpu.vector_store %arg2[%c0_1, %c0_2], %0 {strides = array<i32>} : memref<8x128xf32, #tpu.memory_space<vmem>>, vector<8x128xf32>,
    return
  }
  func.func @transform_0(%arg0: i32) -> (i32, i32) {
    %c0_i32 = arith.constant 0 : i32
    %c0_i32_0 = arith.constant 0 : i32
    return %arg0, %c0_i32 : i32, i32
  }
  func.func @transform_1(%arg0: i32) -> (i32, i32) {
    %c0_i32 = arith.constant 0 : i32
    %c0_i32_0 = arith.constant 0 : i32
    return %arg0, %c0_i32 : i32, i32
  }
}

</mosaic_0001>

<bundles_post_ra>
// kernel: tpu_custom_call.1
= control target key start
LH: loop header
LB: loop body
LE: loop exit
PB: predicated region body
PF: predicated region fallthrough
CT: control target
= control target key end

     0   :  { %6 = vsyncpa [#allocation3], 0  ;;  %s102_s0 = inlined_call_operand.hbm [shape: f32[8,128], index: 0, kind: input, shape index: {}, may-alias: {0,1}]   ;;  %s103_s1 = inlined_call_operand.hbm [shape: f32[8,128], index: 1, kind: output, shape index: {}, may-alias: {0,1}]  }
   0x1   :  { %7 = vsyncpa [#allocation4], 0  ;;  %s84_s6 = smov [#allocation2]  }
   0x2   :  { %s14_s7 = sshll.u32 %s84_s6, 4  ;;  %s15_s7 = int_to_ptr.vmem [resolvable:$true] %s14_s7 }
   0x3   :  { %s48_s8 = scalar_lea.vmem %s15_s7, 128  ;;  %p53_p1 = scmp.lt.s32.totalorder %s15_s7, %s15_s7 }
   0x4   :  { %p49_p0 = scmp.ne.s32.totalorder %s15_s7, %s48_s8  ;;  %p54_p2 = scmp.lt.s32.totalorder %s48_s8, %s48_s8 }
   0x6   :  { %p55_p3 = por %p54_p2, %p53_p1 }
   0x8   :  { %p56_p4 = pnand %p55_p3, %p49_p0 }
   0xa   :  { %59 = shalt.err (!%p56_p4)
}
   0xb   :  { %17 = dma.hbm_to_vmem [thread:$0]  %s102_s0, 128, %s15_s7, [#allocation3]  }
   0xc   :  { %80 = dma.done.wait [#allocation3], 128  }
   0xd   :  { %81 = vsyncadd [#allocation3], 4294967168  ;;  %s85_s11 = smov [#allocation5]   ;;  %v21_v0 = vld [vmem:[#allocation2] sm:$0xff] }
   0xe   :  { %s29_s12 = sshll.u32 %s85_s11, 4  ;;  %22 = vst [vmem:[#allocation5] sm:$0xff] %v21_v0  ;;  %s30_s12 = int_to_ptr.vmem [resolvable:$true] %s29_s12 }
   0xf   :  { %s60_s13 = scalar_lea.vmem %s30_s12, 128  ;;  %p65_p6 = scmp.lt.s32.totalorder %s30_s12, %s30_s12 }
  0x10   :  { %p61_p5 = scmp.ne.s32.totalorder %s30_s12, %s60_s13  ;;  %p66_p7 = scmp.lt.s32.totalorder %s60_s13, %s60_s13 }
  0x12   :  { %p67_p8 = por %p66_p7, %p65_p6 }
  0x14   :  { %p68_p9 = pnand %p67_p8, %p61_p5 }
  0x16   :  { %71 = shalt.err (!%p68_p9)
}
  0x17   :  { %32 = dma.vmem_to_hbm [thread:$0]  %s30_s12, 128, %s103_s1, [#allocation4]  }
  0x18   :  { %82 = dma.done.wait [#allocation4], 128  }
  0x19   :  { %83 = vsyncadd [#allocation4], 4294967168 }
  0x1a   :  { %36 = vsyncpa [#allocation3], 1 }
  0x1b   :  { %37 = vsyncpa [#allocation4], 1 }

</bundles_post_ra>
